<compile_context>
chip_gen: v5e
topology: v5e:2x2
jax: 0.10.0
libtpu: 0.0.40
codegen_flags: <defaults>
</compile_context>

<pallas_src>
import jax
import jax.numpy as jnp
from jax.experimental import pallas as pl
from jax.experimental.pallas import tpu as pltpu

_HIDDEN_PAD = 128   # lane-pad hidden dim (keep at 128; kernel is DMA-bound, not MXU-bound)
_ACTION_PAD = 8     # lane-pad actions only to 8: minimizes output writeback traffic


def _round_up(x, m):
    return (x + m - 1) // m * m


def _mlp_kernel(x_ref, w1_ref, b1_ref, w2_ref, b2_ref, o_ref):
    # fc1 -> bias add (VPU broadcast, free under the DMA/MXU work) -> ReLU
    h = jnp.dot(x_ref[...], w1_ref[...], preferred_element_type=jnp.float32)
    h = jnp.maximum(h + b1_ref[...], 0.0)
    # fc2 -> bias add
    o_ref[...] = (
        jnp.dot(h, w2_ref[...], preferred_element_type=jnp.float32) + b2_ref[...]
    ).astype(o_ref.dtype)


def pack_params(w1, b1, w2, b2, *, hidden_pad=_HIDDEN_PAD, action_pad=_ACTION_PAD):
    """Zero-pad weights/biases to lane-friendly shapes.

    w1: (in, H), b1: (1,H) or (H,), w2: (H, A), b2: (1,A) or (A,)
    (weights stored as (in, out), i.e. transposed vs. PyTorch nn.Linear).

    Returns w1p (in, hidden_pad), b1p (1, hidden_pad), w2p (hidden_pad, action_pad),
    b2p (1, action_pad), all f32, padded lanes zero.
    """
    in_size, hidden = w1.shape
    nb_action = w2.shape[1]
    hidden_pad = max(hidden_pad, _round_up(hidden, 128))
    action_pad = max(action_pad, _round_up(nb_action, 8))

    w1p = jnp.zeros((in_size, hidden_pad), jnp.float32)
    w1p = w1p.at[:, :hidden].set(w1.astype(jnp.float32))
    b1p = jnp.zeros((1, hidden_pad), jnp.float32)
    b1p = b1p.at[0, :hidden].set(jnp.reshape(b1, (-1,)).astype(jnp.float32))

    w2p = jnp.zeros((hidden_pad, action_pad), jnp.float32)
    w2p = w2p.at[:hidden, :nb_action].set(w2.astype(jnp.float32))
    b2p = jnp.zeros((1, action_pad), jnp.float32)
    b2p = b2p.at[0, :nb_action].set(jnp.reshape(b2, (-1,)).astype(jnp.float32))
    return w1p, b1p, w2p, b2p


def network_forward(state, w1p, b1p, w2p, b2p, nb_action, *, block_b=4096):
    """state: (B, input_size); packed params from pack_params().
    Returns q-values of shape (B, nb_action), f32."""
    assert block_b % 8 == 0
    B, in_size = state.shape
    assert w1p.shape[0] == in_size
    hidden_pad = w1p.shape[1]
    action_pad = w2p.shape[1]

    x = state.astype(jnp.float32)
    out_shape = jax.ShapeDtypeStruct((B, action_pad), jnp.float32)

    if B <= block_b:
        # Single block, no grid: the whole problem fits comfortably in VMEM,
        # skip the grid/pipeline machinery entirely.
        # TODO(synk): on v7x, very large "medium" batches could force a 2-step
        # parallel grid here to engage the second TensorCore.
        vmem = lambda: pl.BlockSpec(memory_space=pltpu.MemorySpace.VMEM)
        out = pl.pallas_call(
            _mlp_kernel,
            out_shape=out_shape,
            in_specs=[vmem(), vmem(), vmem(), vmem(), vmem()],
            out_specs=vmem(),
        )(x, w1p, b1p, w2p, b2p)
    else:
        # Tile only the batch axis (partial last block allowed); weights/biases
        # map to block (0,0) every step so they stay VMEM-resident and are
        # DMA'd once.  Batch axis is "parallel" -> v7x shards it over both TCs.
        grid = (pl.cdiv(B, block_b),)
        out = pl.pallas_call(
            _mlp_kernel,
            out_shape=out_shape,
            grid_spec=pl.GridSpec(
                grid=grid,
                in_specs=[
                    pl.BlockSpec((block_b, in_size), lambda i: (i, 0)),
                    pl.BlockSpec((in_size, hidden_pad), lambda i: (0, 0)),
                    pl.BlockSpec((1, hidden_pad), lambda i: (0, 0)),
                    pl.BlockSpec((hidden_pad, action_pad), lambda i: (0, 0)),
                    pl.BlockSpec((1, action_pad), lambda i: (0, 0)),
                ],
                out_specs=pl.BlockSpec((block_b, action_pad), lambda i: (i, 0)),
            ),
            compiler_params=pltpu.CompilerParams(
                dimension_semantics=("parallel",),
                vmem_limit_bytes=32 * 1024 * 1024,
            ),
        )(x, w1p, b1p, w2p, b2p)

    return out[:, :nb_action]


def init_params(key, input_size, nb_action, hidden=30):
    """Deterministic init mimicking torch.nn.Linear (uniform(-1/sqrt(fan_in), +))."""
    k1, k2, k3, k4 = jax.random.split(key, 4)
    bound1 = 1.0 / jnp.sqrt(input_size)
    bound2 = 1.0 / jnp.sqrt(hidden)
    # Stored as (in, out) = transpose of PyTorch's (out, in) weight layout.
    w1 = jax.random.uniform(k1, (input_size, hidden), jnp.float32, -bound1, bound1)
    b1 = jax.random.uniform(k2, (1, hidden), jnp.float32, -bound1, bound1)
    w2 = jax.random.uniform(k3, (hidden, nb_action), jnp.float32, -bound2, bound2)
    b2 = jax.random.uniform(k4, (1, nb_action), jnp.float32, -bound2, bound2)
    return w1, b1, w2, b2


def network_forward_ref(state, w1, b1, w2, b2):
    h = jnp.maximum(state @ w1 + b1, 0.0)
    return h @ w2 + b2


if __name__ == "__main__":
    # Shapes consistent with the DQN self-driving-car usage: 5 sensor inputs, 3 actions.
    batch = 8
    input_size = 5
    nb_action = 3

    key = jax.random.PRNGKey(0)
    kx, kp, kx2 = jax.random.split(key, 3)
    state = jax.random.normal(kx, (batch, input_size), jnp.float32)
    w1, b1, w2, b2 = init_params(kp, input_size, nb_action)
    w1p, b1p, w2p, b2p = pack_params(w1, b1, w2, b2)

    # Small-batch (gridless single-block) path.
    q = network_forward(state, w1p, b1p, w2p, b2p, nb_action)
    q = jax.block_until_ready(q)
    q_ref = network_forward_ref(state, w1, b1, w2, b2)
    assert q.shape == (batch, nb_action)
    assert jnp.allclose(q, q_ref, atol=1e-4, rtol=1e-4)

    # Larger-batch tiled path with a partial last block (600 = 4*128 + 88) to
    # exercise the cdiv/edge-block handling and the resident-weights grid.
    big_batch = 600
    big_state = jax.random.normal(kx2, (big_batch, input_size), jnp.float32)
    qb = network_forward(big_state, w1p, b1p, w2p, b2p, nb_action, block_b=128)
    qb = jax.block_until_ready(qb)
    qb_ref = network_forward_ref(big_state, w1, b1, w2, b2)
    assert qb.shape == (big_batch, nb_action)
    assert jnp.allclose(qb, qb_ref, atol=1e-4, rtol=1e-4)

    print("KERNEL_OK")
</pallas_src>

<mosaic_0001>
module attributes {stable_mosaic.version = 11 : i64} {
  func.func @_mlp_kernel(%arg0: memref<8x5xf32, #tpu.memory_space<vmem>>, %arg1: memref<5x128xf32, #tpu.memory_space<vmem>>, %arg2: memref<1x128xf32, #tpu.memory_space<vmem>>, %arg3: memref<128x8xf32, #tpu.memory_space<vmem>>, %arg4: memref<1x8xf32, #tpu.memory_space<vmem>>, %arg5: memref<8x8xf32, #tpu.memory_space<vmem>>) attributes {dimension_semantics = [], scalar_prefetch = 0 : i64, scratch_operands = 0 : i64, tpu.core_type = #tpu.core_type<tc>} {
    %c0 = arith.constant 0 : index
    %c0_0 = arith.constant 0 : index
    %0 = vector.load %arg0[%c0, %c0_0] : memref<8x5xf32, #tpu.memory_space<vmem>>, vector<8x5xf32>
    %c0_1 = arith.constant 0 : index
    %c0_2 = arith.constant 0 : index
    %1 = vector.load %arg1[%c0_1, %c0_2] : memref<5x128xf32, #tpu.memory_space<vmem>>, vector<5x128xf32>
    %cst = arith.constant dense<0.000000e+00> : vector<8x128xf32>
    %2 = tpu.matmul %0, %1, %cst {dimension_numbers = #tpu.dot_dimension_numbers<[1], [0], [0], [1], [0, 0, 1, 1], [], []>} : vector<8x5xf32>, vector<5x128xf32>, vector<8x128xf32> -> vector<8x128xf32>
    %c0_3 = arith.constant 0 : index
    %c0_4 = arith.constant 0 : index
    %3 = vector.load %arg2[%c0_3, %c0_4] : memref<1x128xf32, #tpu.memory_space<vmem>>, vector<1x128xf32>
    %4 = vector.broadcast %3 : vector<1x128xf32> to vector<8x128xf32>
    %5 = arith.addf %2, %4 : vector<8x128xf32>
    %cst_5 = arith.constant 0.000000e+00 : f32
    %6 = vector.broadcast %cst_5 : f32 to vector<8x128xf32>
    %7 = arith.maximumf %5, %6 : vector<8x128xf32>
    %c0_6 = arith.constant 0 : index
    %c0_7 = arith.constant 0 : index
    %8 = vector.load %arg3[%c0_6, %c0_7] : memref<128x8xf32, #tpu.memory_space<vmem>>, vector<128x8xf32>
    %cst_8 = arith.constant dense<0.000000e+00> : vector<8x8xf32>
    %9 = tpu.matmul %7, %8, %cst_8 {dimension_numbers = #tpu.dot_dimension_numbers<[1], [0], [0], [1], [0, 0, 1, 1], [], []>} : vector<8x128xf32>, vector<128x8xf32>, vector<8x8xf32> -> vector<8x8xf32>
    %c0_9 = arith.constant 0 : index
    %c0_10 = arith.constant 0 : index
    %10 = vector.load %arg4[%c0_9, %c0_10] : memref<1x8xf32, #tpu.memory_space<vmem>>, vector<1x8xf32>
    %11 = vector.broadcast %10 : vector<1x8xf32> to vector<8x8xf32>
    %12 = arith.addf %9, %11 : vector<8x8xf32>
    %c0_11 = arith.constant 0 : index
    %c0_12 = arith.constant 0 : index
    %13 = vector.load %arg5[%c0_11, %c0_12] : memref<8x8xf32, #tpu.memory_space<vmem>>, vector<8x8xf32>
    tpu.vector_store %arg5[%c0_11, %c0_12], %12 {strides = array<i32>} : memref<8x8xf32, #tpu.memory_space<vmem>>, vector<8x8xf32>,
    return
  }
}

</mosaic_0001>

<bundles_post_ra>
// kernel: tpu_custom_call.1
= control target key start
LH: loop header
LB: loop body
LE: loop exit
PB: predicated region body
PF: predicated region fallthrough
CT: control target
= control target key end

     0   :  { %vm31_vm0 = vcmask 1044480   ;;  %vm27_vm1 = vcmask 39936   ;;  %s239_s0 = inlined_call_operand.vmem [shape: f32[8,5], index: 0, kind: input, shape index: {}]   ;;  %s240_s1 = inlined_call_operand.vmem [shape: f32[5,128], index: 1, kind: input, shape index: {}]   ;;  %s241_s2 = inlined_call_operand.vmem [shape: f32[1,128], index: 2, kind: input, shape index: {}]   ;;  %s242_s3 = inlined_call_operand.vmem [shape: f32[128,8], index: 3, kind: input, shape index: {}]   ;;  %s243_s4 = inlined_call_operand.vmem [shape: f32[1,8], index: 4, kind: input, shape index: {}]   ;;  %s244_s5 = inlined_call_operand.hbm [shape: f32[8,8], index: 5, kind: output, shape index: {}]  }
   0x1   :  { %v22_v0 = vld [vmem:[%s240_s1] sm:$0x1f]  ;;  %v71_v2 = vld [vmem:[%s242_s3 + $0x78] sm:$0xff]  ;;  %v70_v3 = vld [vmem:[%s242_s3 + $0x70] sm:$0xff] }
   0x2   :  { %v21_v1 = vld [vmem:[%s239_s0] sm:$0xff]  ;;  %114 = vmatpush.msk.msra.mxu0 %vm31_vm0, %v22_v0  ;;  %76 = vmatpush.msra.mxu1 %v71_v2  ;;  %v69_v4 = vld [vmem:[%s242_s3 + $0x68] sm:$0xff]  ;;  %v67_v6 = vld [vmem:[%s242_s3 + $0x58] sm:$0xff] }
   0x3   :  { %115 = vmatmul.msk.f32.vlgmr.msra.gmra.mxu0 %vm27_vm1, %v21_v1  ;;  %v68_v5 = vld [vmem:[%s242_s3 + $0x60] sm:$0xff] }
   0x4   :  { %77 = vmatpush.msra.mxu1 %v70_v3 }
   0x6   :  { %78 = vmatpush.msra.mxu1 %v69_v4 }
   0x7   :  { %10 = vsyncpa [#allocation3], 0  ;;  %v66_v7 = vld [vmem:[%s242_s3 + $0x50] sm:$0xff]  ;;  %v65_v8 = vld [vmem:[%s242_s3 + $0x48] sm:$0xff]  ;;  %s145_s29 = smov [#allocation2]   ;;  %s105_s8 = sshll.u32 %s244_s5, 4  ;;  %s106_s8 = int_to_ptr.hbm [resolvable:$true] %s105_s8 }
   0x8   :  { %79 = vmatpush.msra.mxu1 %v68_v5  ;;  %v64_v9 = vld [vmem:[%s242_s3 + $0x40] sm:$0xff]  ;;  %v63_v10 = vld [vmem:[%s242_s3 + $0x38] sm:$0xff]  ;;  %v62_v11 = vld [vmem:[%s242_s3 + $0x30] sm:$0xff]  ;;  %s103_s30 = sshll.u32 %s145_s29, 4  ;;  %vm96_vm2 = vcmask 64512   ;;  %s104_s30 = int_to_ptr.vmem [resolvable:$true] %s103_s30 }
   0x9   :  { %v61_v12 = vld [vmem:[%s242_s3 + $0x28] sm:$0xff]  ;;  %v60_v13 = vld [vmem:[%s242_s3 + $0x20] sm:$0xff]  ;;  %v59_v14 = vld [vmem:[%s242_s3 + $0x18] sm:$0xff] }
   0xa   :  { %80 = vmatpush.msra.mxu1 %v67_v6  ;;  %v58_v15 = vld [vmem:[%s242_s3 + $0x10] sm:$0xff]  ;;  %v57_v16 = vld [vmem:[%s242_s3 + $0x8] sm:$0xff]  ;;  %v56_v17 = vld [vmem:[%s242_s3] sm:$0xff] }
   0xb   :  { %v117_v18 = vld [vmem:[%s241_s2] ss:$0 sm:$0xff] }
   0xc   :  { %81 = vmatpush.msra.mxu1 %v66_v7  ;;  %v118_v22 = vld [vmem:[%s243_s4] ss:$0 sm:$0xff] }
   0xe   :  { %82 = vmatpush.msra.mxu1 %v65_v8 }
  0x10   :  { %83 = vmatpush.msra.mxu1 %v64_v9 }
  0x12   :  { %84 = vmatpush.msra.mxu1 %v63_v10 }
  0x14   :  { %85 = vmatpush.msra.mxu1 %v62_v11 }
  0x16   :  { %86 = vmatpush.msra.mxu1 %v61_v12 }
  0x18   :  { %87 = vmatpush.msra.mxu1 %v60_v13 }
  0x1a   :  { %88 = vmatpush.msra.mxu1 %v59_v14 }
  0x1c   :  { %89 = vmatpush.msra.mxu1 %v58_v15 }
  0x1e   :  { %90 = vmatpush.msra.mxu1 %v57_v16 }
  0x20   :  { %91 = vmatpush.msra.mxu1 %v56_v17 }
  0x80   :  { %v52_v19 = vpop.f32.mrf.mxu0 }
  0x81   :  { %v53_v20 = vadd.f32 %v117_v18, %v52_v19 }
  0x83   :  { %v55_v21 = vmax.f32 %v53_v20, 0.0 }
  0x85   :  { %92 = vmatmul.f32.vlgmr.msra.gmra.mxu1 %v55_v21 }
 0x102   :  { %v93_v23 = vpop.f32.mrf.mxu1 }
 0x103   :  { %v94_v24 = vadd.f32 %v118_v22, %v93_v23 }
 0x105   :  { %97 = vst.msk [vmem:[#allocation2] sm:$0xff] %vm96_vm2, %v94_v24 }
 0x106   :  { %108 = dma.vmem_to_hbm [thread:$0]  %s104_s30, 128, %s106_s8, [#allocation3]  }
 0x107   :  { %143 = dma.done.wait [#allocation3], 128  }
 0x108   :  { %144 = vsyncadd [#allocation3], 4294967168 }
 0x109   :  { %113 = vsyncpa [#allocation3], 1 }

</bundles_post_ra>
